<compile_context>
chip_gen: v6e
topology: v6e:2x2x1
jax: 0.10.0
libtpu: 0.0.40
codegen_flags: <defaults>
</compile_context>

<pallas_src>
import functools

import jax
import jax.numpy as jnp
from jax.experimental import pallas as pl
from jax.experimental.pallas import tpu as pltpu


def _round_up(x, m):
    return m * pl.cdiv(x, m)


def _make_prob_kernel(num_real_classes, use_bf16_matmul):
    def kernel(logits_ref, pos_t_ref, prob_ref):
        # logits_ref: (TM, T_pad) input dtype; pos_t_ref: (T_pad, C_pad) f32;
        # prob_ref: (TM, C_pad) f32
        logits = logits_ref[...].astype(jnp.float32)
        prob_to_token = jax.nn.sigmoid(logits)                 # VPU/EUP, f32
        pos_t = pos_t_ref[...]
        if use_bf16_matmul:
            prob_to_token = prob_to_token.astype(jnp.bfloat16)
            pos_t = pos_t.astype(jnp.bfloat16)
        else:
            pos_t = pos_t.astype(jnp.float32)
        prob = jnp.dot(prob_to_token, pos_t,
                       preferred_element_type=jnp.float32)     # MXU, f32 acc
        # Mask padded class lanes so they can never win the downstream top-k;
        # output stays lane-dense (full 128-wide stores, no post-kernel slice).
        col = jax.lax.broadcasted_iota(jnp.int32, prob.shape, dimension=1)
        prob_ref[...] = jnp.where(col < num_real_classes, prob,
                                  jnp.float32(-1e30))
    return kernel


def post_process_coco_grounding(out_logits, out_bbox, positive_map,
                                target_sizes, num_select, not_to_xyxy=False,
                                use_bf16_matmul=False):
    B, Q, T = out_logits.shape
    C, T2 = positive_map.shape
    assert T2 == T
    assert target_sizes.shape == (B, 2)

    M = B * Q
    M_pad = _round_up(M, 8)          # sublane alignment (trivially small pad)
    T_pad = _round_up(T, 128)        # contraction dim (T=256 -> no pad)
    C_pad = _round_up(C, 128)        # lane-dense output width (91 -> 128)

    # Keep the (dominant, HBM-bound) logits operand in its original dtype and
    # only pad when strictly necessary; the kernel upcasts per tile.
    logits_flat = out_logits.reshape(M, T)
    if (M_pad, T_pad) != (M, T):
        logits_flat = jnp.pad(logits_flat, ((0, M_pad - M), (0, T_pad - T)))

    # Pre-transposed, zero-padded positive map: (T_pad, C_pad) f32 (~128 KiB).
    # Padded T rows are zero (padded logit cols contribute nothing); padded C
    # columns are masked to -1e30 inside the kernel.
    pos_t = jnp.zeros((T_pad, C_pad), dtype=jnp.float32)
    pos_t = pos_t.at[:T, :C].set(positive_map.astype(jnp.float32).T)

    # Row tile: multiple of 8 (and of 128 for big M, dense MXU passes on v5e).
    TM = min(512, M_pad)
    grid_m = pl.cdiv(M_pad, TM)

    kernel = _make_prob_kernel(C, use_bf16_matmul)
    prob_pad = pl.pallas_call(
        kernel,
        out_shape=jax.ShapeDtypeStruct((M_pad, C_pad), jnp.float32),
        grid=(grid_m,),
        in_specs=[
            pl.BlockSpec((TM, T_pad), lambda i: (i, 0)),
            pl.BlockSpec((T_pad, C_pad), lambda i: (0, 0)),  # resident block
        ],
        out_specs=pl.BlockSpec((TM, C_pad), lambda i: (i, 0)),
        compiler_params=pltpu.CompilerParams(
            dimension_semantics=("parallel",)),   # v7x: shard tiles over 2 TCs
    )(logits_flat, pos_t)

    # Row slice only (padded rows, sigmoid(0)-based garbage, must not reach
    # top-k); columns stay lane-dense C_pad through top-k.
    prob = prob_pad[:M].reshape(B, Q, C_pad)

    # ---- top-k + gather + box math on the num_select survivors only --------
    # TODO(synk): data-dependent top-k / gather has no clean Pallas TPU
    # equivalent; kept as JAX glue (jax.lax.top_k / take_along_axis).
    topk_values, topk_indexes = jax.lax.top_k(
        prob.reshape(B, Q * C_pad), num_select)
    scores = topk_values
    topk_boxes = topk_indexes // C_pad          # query index (== idx // C)
    labels = topk_indexes % C_pad               # class id (< C, padded masked)

    sel = jnp.take_along_axis(out_bbox.astype(jnp.float32),
                              topk_boxes[..., None], axis=1)   # (B, K, 4)
    if not_to_xyxy:
        boxes = sel
    else:
        cx, cy, w, h = sel[..., 0], sel[..., 1], sel[..., 2], sel[..., 3]
        boxes = jnp.stack([cx - 0.5 * w, cy - 0.5 * h,
                           cx + 0.5 * w, cy + 0.5 * h], axis=-1)

    img_h = target_sizes[:, 0].astype(jnp.float32)
    img_w = target_sizes[:, 1].astype(jnp.float32)
    scale_fct = jnp.stack([img_w, img_h, img_w, img_h], axis=1)  # (B, 4)
    boxes = boxes * scale_fct[:, None, :]
    return scores, labels, boxes


def _reference(out_logits, out_bbox, positive_map, target_sizes, num_select):
    # Pure-JAX reference replicating the PyTorch forward.
    B, Q, T = out_logits.shape
    C = positive_map.shape[0]
    prob_to_token = jax.nn.sigmoid(out_logits.astype(jnp.float32))
    prob = prob_to_token @ positive_map.astype(jnp.float32).T
    topk_values, topk_indexes = jax.lax.top_k(prob.reshape(B, Q * C), num_select)
    topk_boxes = topk_indexes // C
    labels = topk_indexes % C
    b = out_bbox.astype(jnp.float32)
    cx, cy, w, h = b[..., 0], b[..., 1], b[..., 2], b[..., 3]
    boxes = jnp.stack([cx - 0.5 * w, cy - 0.5 * h, cx + 0.5 * w, cy + 0.5 * h],
                      axis=-1)
    boxes = jnp.take_along_axis(boxes, topk_boxes[..., None], axis=1)
    img_h = target_sizes[:, 0].astype(jnp.float32)
    img_w = target_sizes[:, 1].astype(jnp.float32)
    scale_fct = jnp.stack([img_w, img_h, img_w, img_h], axis=1)
    boxes = boxes * scale_fct[:, None, :]
    return topk_values, labels, boxes


if __name__ == "__main__":
    B, Q, T, C = 2, 16, 256, 91   # batch, queries, token-dim, #coco category ids
    NUM_SELECT = 16

    key = jax.random.PRNGKey(0)
    k1, k2, k3, _ = jax.random.split(key, 4)

    out_logits = jax.random.normal(k1, (B, Q, T), dtype=jnp.float32)
    out_bbox = jax.random.uniform(k2, (B, Q, 4), dtype=jnp.float32,
                                  minval=0.05, maxval=0.95)
    # Deterministic synthetic positive_map: sparse 0/1 token spans per class,
    # rows normalized (mirrors create_positive_map_from_span + id remap).
    pm_mask = jax.random.bernoulli(k3, p=0.03, shape=(C, T)).astype(jnp.float32)
    row_sum = jnp.maximum(pm_mask.sum(axis=1, keepdims=True), 1.0)
    positive_map = pm_mask / row_sum
    # target sizes (h, w) per image
    target_sizes = jnp.array([[480.0, 640.0], [512.0, 768.0]], dtype=jnp.float32)

    scores, labels, boxes = post_process_coco_grounding(
        out_logits, out_bbox, positive_map, target_sizes, NUM_SELECT)
    jax.block_until_ready((scores, labels, boxes))

    # sanity check against pure-JAX reference (exact f32 ranking)
    r_scores, r_labels, r_boxes = _reference(
        out_logits, out_bbox, positive_map, target_sizes, NUM_SELECT)
    assert jnp.allclose(scores, r_scores, atol=1e-5), "scores mismatch"
    assert jnp.array_equal(labels, r_labels), "labels mismatch"
    assert jnp.allclose(boxes, r_boxes, atol=1e-4), "boxes mismatch"

    # exercise the not_to_xyxy=True path
    s2, l2, b2 = post_process_coco_grounding(
        out_logits, out_bbox, positive_map, target_sizes, NUM_SELECT,
        not_to_xyxy=True)
    jax.block_until_ready((s2, l2, b2))

    # exercise the optional bf16-MXU path (values agree loosely; ranking of
    # near-ties may legitimately differ, so no label equality check here)
    s3, l3, b3 = post_process_coco_grounding(
        out_logits, out_bbox, positive_map, target_sizes, NUM_SELECT,
        use_bf16_matmul=True)
    jax.block_until_ready((s3, l3, b3))
    assert jnp.allclose(s3, r_scores, atol=5e-2), "bf16 scores diverged"

    print("KERNEL_OK")
</pallas_src>

<mosaic_0001>
module attributes {stable_mosaic.version = 11 : i64} {
  func.func @kernel(%arg0: i32, %arg1: memref<32x256xf32, #tpu.memory_space<vmem>>, %arg2: memref<256x128xf32, #tpu.memory_space<vmem>>, %arg3: memref<32x128xf32, #tpu.memory_space<vmem>>) attributes {dimension_semantics = [#tpu.dimension_semantics<parallel>], iteration_bounds = array<i64: 1>, scalar_prefetch = 0 : i64, scratch_operands = 0 : i64, tpu.core_type = #tpu.core_type<tc>, window_params = [{transform_indices = @transform_0, window_bounds = array<i64: 32, 256>}, {pipeline_mode = #tpu.pipeline_mode<synchronous>, transform_indices = @transform_1, window_bounds = array<i64: 256, 128>}, {transform_indices = @transform_2, window_bounds = array<i64: 32, 128>}]} {
    %c0 = arith.constant 0 : index
    %c0_0 = arith.constant 0 : index
    %0 = vector.load %arg1[%c0, %c0_0] : memref<32x256xf32, #tpu.memory_space<vmem>>, vector<32x256xf32>
    %1 = arith.negf %0 : vector<32x256xf32>
    %2 = math.exp %1 : vector<32x256xf32>
    %cst = arith.constant 1.000000e+00 : f32
    %3 = vector.broadcast %cst : f32 to vector<32x256xf32>
    %4 = arith.addf %3, %2 : vector<32x256xf32>
    %5 = arith.divf %3, %4 : vector<32x256xf32>
    %c0_1 = arith.constant 0 : index
    %c0_2 = arith.constant 0 : index
    %6 = vector.load %arg2[%c0_1, %c0_2] : memref<256x128xf32, #tpu.memory_space<vmem>>, vector<256x128xf32>
    %cst_3 = arith.constant dense<0.000000e+00> : vector<32x128xf32>
    %7 = tpu.matmul %5, %6, %cst_3 {dimension_numbers = #tpu.dot_dimension_numbers<[1], [0], [0], [1], [0, 0, 1, 1], [], []>} : vector<32x256xf32>, vector<256x128xf32>, vector<32x128xf32> -> vector<32x128xf32>
    %8 = tpu.iota {dimensions = array<i32: 1>} : vector<32x128xi32>
    %c91_i32 = arith.constant 91 : i32
    %9 = vector.broadcast %c91_i32 : i32 to vector<32x128xi32>
    %10 = arith.cmpi slt, %8, %9 : vector<32x128xi32>
    %cst_4 = arith.constant -1.000000e+30 : f32
    %11 = vector.broadcast %cst_4 : f32 to vector<32x128xf32>
    %12 = arith.select %10, %7, %11 : vector<32x128xi1>, vector<32x128xf32>
    %c0_5 = arith.constant 0 : index
    %c0_6 = arith.constant 0 : index
    %13 = vector.load %arg3[%c0_5, %c0_6] : memref<32x128xf32, #tpu.memory_space<vmem>>, vector<32x128xf32>
    tpu.vector_store %arg3[%c0_5, %c0_6], %12 {strides = array<i32>} : memref<32x128xf32, #tpu.memory_space<vmem>>, vector<32x128xf32>,
    return
  }
  func.func @transform_0(%arg0: i32) -> (i32, i32) {
    %c0_i32 = arith.constant 0 : i32
    %c0_i32_0 = arith.constant 0 : i32
    return %arg0, %c0_i32 : i32, i32
  }
  func.func @transform_1(%arg0: i32) -> (i32, i32) {
    %c0_i32 = arith.constant 0 : i32
    %c0_i32_0 = arith.constant 0 : i32
    %c0_i32_1 = arith.constant 0 : i32
    return %c0_i32, %c0_i32_0 : i32, i32
  }
  func.func @transform_2(%arg0: i32) -> (i32, i32) {
    %c0_i32 = arith.constant 0 : i32
    %c0_i32_0 = arith.constant 0 : i32
    return %arg0, %c0_i32 : i32, i32
  }
}

</mosaic_0001>

<bundles_post_ra>
// kernel: tpu_custom_call.1
= control target key start
LH: loop header
LB: loop body
LE: loop exit
PB: predicated region body
PF: predicated region fallthrough
CT: control target
= control target key end

     0   :  { %7 = vsyncpa [#allocation3], 0  ;;  %s472_s0 = inlined_call_operand.hbm [shape: f32[32,256], index: 0, kind: input, shape index: {}]   ;;  %s473_s1 = inlined_call_operand.hbm [shape: f32[256,128], index: 1, kind: input, shape index: {}]   ;;  %s474_s2 = inlined_call_operand.hbm [shape: f32[32,128], index: 2, kind: output, shape index: {}]  }
   0x1   :  { %8 = vsyncpa [#allocation6], 0 }
   0x2   :  { %9 = vsyncpa [#allocation4], 0  ;;  %s431_s9 = smov [#allocation2]  }
   0x3   :  { %s15_s10 = sshll.u32 %s431_s9, 4  ;;  %s16_s10 = int_to_ptr.vmem [resolvable:$true] %s15_s10 }
   0x4   :  { %s373_s11 = scalar_lea.vmem %s16_s10, 1024  ;;  %p378_p1 = scmp.lt.s32.totalorder %s16_s10, %s16_s10 }
   0x5   :  { %p374_p0 = scmp.ne.s32.totalorder %s16_s10, %s373_s11  ;;  %p379_p2 = scmp.lt.s32.totalorder %s373_s11, %s373_s11 }
   0x7   :  { %p380_p3 = por %p379_p2, %p378_p1 }
   0x9   :  { %p381_p4 = pnand %p380_p3, %p374_p0 }
   0xb   :  { %384 = shalt.err (!%p381_p4)
}
   0xc   :  { %s432_s12 = smov 256   ;;  %s433_s13 = smov 16  }
   0xd   :  { %21 = dma.hbm_to_vmem [thread:$0]  %s472_s0, 1024, %s16_s10, [#allocation3], %s432_s12, %s432_s12, %s433_s13  }
   0xe   :  { %s434_s16 = smov [#allocation5]  }
   0xf   :  { %s27_s17 = sshll.u32 %s434_s16, 4  ;;  %s28_s17 = int_to_ptr.vmem [resolvable:$true] %s27_s17 }
  0x10   :  { %s393_s18 = scalar_lea.vmem %s28_s17, 4096  ;;  %p398_p6 = scmp.lt.s32.totalorder %s28_s17, %s28_s17 }
  0x11   :  { %p394_p5 = scmp.ne.s32.totalorder %s28_s17, %s393_s18  ;;  %p399_p7 = scmp.lt.s32.totalorder %s393_s18, %s393_s18 }
  0x13   :  { %p400_p8 = por %p399_p7, %p398_p6 }
  0x15   :  { %p401_p9 = pnand %p400_p8, %p394_p5 }
  0x17   :  { %404 = shalt.err (!%p401_p9)
}
  0x18   :  { %s435_s19 = smov 128   ;;  %s436_s20 = smov 8  }
  0x19   :  { %33 = dma.hbm_to_vmem [thread:$0]  %s473_s1, 4096, %s28_s17, [#allocation6], %s435_s19, %s435_s19, %s436_s20  }
  0x1a   :  { %425 = dma.done.wait [#allocation3], 1024  }
  0x1b   :  { %426 = vsyncadd [#allocation3], 4294966272 }
  0x1c   :  { %427 = dma.done.wait [#allocation6], 4096  }
  0x1d   :  { %428 = vsyncadd [#allocation6], 4294963200  ;;  %v127_v0 = vld [vmem:[#allocation5 + $0xf8] sm:$0xff]  ;;  %v126_v2 = vld [vmem:[#allocation5 + $0xf0] sm:$0xff]  ;;  %s437_s0 = smov [#allocation7]  }
  0x1e   :  { %v111_v1 = vld [vmem:[#allocation5 + $0x78] sm:$0xff]  ;;  %250 = vmatprep.subr.mxu0 %v127_v0  ;;  %294 = vmatprep.subr.mxu1 %v127_v0  ;;  %v110_v3 = vld [vmem:[#allocation5 + $0x70] sm:$0xff]  ;;  %v125_v4 = vld [vmem:[#allocation5 + $0xe8] sm:$0xff]  ;;  %s229_s1 = sshll.u32 %s437_s0, 4  ;;  %s230_s1 = int_to_ptr.vmem [resolvable:$true] %s229_s1 }
  0x1f   :  { %251 = vmatpush3.msra.mxu0 %v111_v1  ;;  %310 = vmatpush3.msra.mxu1 %v111_v1  ;;  %v109_v5 = vld [vmem:[#allocation5 + $0x68] sm:$0xff]  ;;  %v124_v6 = vld [vmem:[#allocation5 + $0xe0] sm:$0xff]  ;;  %v123_v8 = vld [vmem:[#allocation5 + $0xd8] sm:$0xff]  ;;  %s405_s23 = scalar_lea.vmem %s230_s1, 512  ;;  %p410_p11 = scmp.lt.s32.totalorder %s230_s1, %s230_s1 }
  0x20   :  { %252 = vmatprep.subr.mxu0 %v126_v2  ;;  %295 = vmatprep.subr.mxu1 %v126_v2  ;;  %v108_v7 = vld [vmem:[#allocation5 + $0x60] sm:$0xff]  ;;  %v107_v9 = vld [vmem:[#allocation5 + $0x58] sm:$0xff]  ;;  %v122_v10 = vld [vmem:[#allocation5 + $0xd0] sm:$0xff]  ;;  %p406_p10 = scmp.ne.s32.totalorder %s230_s1, %s405_s23  ;;  %p411_p12 = scmp.lt.s32.totalorder %s405_s23, %s405_s23 }
  0x21   :  { %253 = vmatpush3.msra.mxu0 %v110_v3  ;;  %311 = vmatpush3.msra.mxu1 %v110_v3  ;;  %v106_v11 = vld [vmem:[#allocation5 + $0x50] sm:$0xff]  ;;  %v121_v12 = vld [vmem:[#allocation5 + $0xc8] sm:$0xff]  ;;  %v120_v14 = vld [vmem:[#allocation5 + $0xc0] sm:$0xff] }
  0x22   :  { %254 = vmatprep.subr.mxu0 %v125_v4  ;;  %296 = vmatprep.subr.mxu1 %v125_v4  ;;  %v105_v13 = vld [vmem:[#allocation5 + $0x48] sm:$0xff]  ;;  %v104_v16 = vld [vmem:[#allocation5 + $0x40] sm:$0xff]  ;;  %v43_v24 = vld [vmem:[#allocation2 + $0x18] sm:$0xff]  ;;  %p412_p13 = por %p411_p12, %p410_p11 }
  0x23   :  { %255 = vmatpush3.msra.mxu0 %v109_v5  ;;  %312 = vmatpush3.msra.mxu1 %v109_v5  ;;  %v41_v15 = vld [vmem:[#allocation2 + $0x8] sm:$0xff]  ;;  %v40_v19 = vld [vmem:[#allocation2] sm:$0xff]  ;;  %v47_v25 = vld [vmem:[#allocation2 + $0x38] sm:$0xff]  ;;  %v245_v28 = vmul.f32 -1.442695, %v43_v24 }
  0x24   :  { %256 = vmatprep.subr.mxu0 %v124_v6  ;;  %297 = vmatprep.subr.mxu1 %v124_v6  ;;  %v243_v17 = vmul.f32 -1.442695, %v41_v15  ;;  %v45_v18 = vld [vmem:[#allocation2 + $0x28] sm:$0xff]  ;;  %v44_v20 = vld [vmem:[#allocation2 + $0x20] sm:$0xff]  ;;  %v242_v22 = vmul.f32 -1.442695, %v40_v19  ;;  %p413_p0 = pnand %p412_p13, %p406_p10 }
  0x25   :  { %257 = vmatpush3.msra.mxu0 %v108_v7  ;;  %313 = vmatpush3.msra.mxu1 %v108_v7  ;;  %v247_v21 = vmul.f32 -1.442695, %v45_v18  ;;  %v246_v23 = vmul.f32 -1.442695, %v44_v20  ;;  %v42_v26 = vld [vmem:[#allocation2 + $0x10] sm:$0xff]  ;;  %v119_v27 = vld [vmem:[#allocation5 + $0xb8] sm:$0xff] }
  0x26   :  { %258 = vmatprep.subr.mxu0 %v123_v8  ;;  %298 = vmatprep.subr.mxu1 %v123_v8  ;;  %333 = vpow2.f32 %v243_v17  ;;  %v249_v29 = vmul.f32 -1.442695, %v47_v25  ;;  %v103_v30 = vld [vmem:[#allocation5 + $0x38] sm:$0xff]  ;;  %v244_v31 = vmul.f32 -1.442695, %v42_v26  ;;  %v46_v32 = vld [vmem:[#allocation2 + $0x30] sm:$0xff]  ;;  %v213_v8 = vlaneseq }
  0x27   :  { %259 = vmatpush3.msra.mxu0 %v107_v9  ;;  %314 = vmatpush3.msra.mxu1 %v107_v9  ;;  %335 = vpow2.f32 %v247_v21  ;;  %v118_v33 = vld [vmem:[#allocation5 + $0xb0] sm:$0xff]  ;;  %v248_v34 = vmul.f32 -1.442695, %v46_v32  ;;  %v117_v36 = vld [vmem:[#allocation5 + $0xa8] sm:$0xff]  ;;  %v116_v38 = vld [vmem:[#allocation5 + $0xa0] sm:$0xff] }
  0x28   :  { %260 = vmatprep.subr.mxu0 %v122_v10  ;;  %299 = vmatprep.subr.mxu1 %v122_v10  ;;  %337 = vpow2.f32 %v242_v22  ;;  %v102_v35 = vld [vmem:[#allocation5 + $0x30] sm:$0xff]  ;;  %v101_v37 = vld [vmem:[#allocation5 + $0x28] sm:$0xff]  ;;  %v100_v39 = vld [vmem:[#allocation5 + $0x20] sm:$0xff]  ;;  %v214_v9 = vand.u32 127, %v213_v8 }
  0x29   :  { %261 = vmatpush3.msra.mxu0 %v106_v11  ;;  %315 = vmatpush3.msra.mxu1 %v106_v11  ;;  %339 = vpow2.f32 %v246_v23  ;;  %v115_v40 = vld [vmem:[#allocation5 + $0x98] sm:$0xff]  ;;  %v114_v42 = vld [vmem:[#allocation5 + $0x90] sm:$0xff]  ;;  %v113_v45 = vld [vmem:[#allocation5 + $0x88] sm:$0xff] }
  0x2a   :  { %262 = vmatprep.subr.mxu0 %v121_v12  ;;  %300 = vmatprep.subr.mxu1 %v121_v12  ;;  %341 = vpow2.f32 %v245_v28  ;;  %v99_v41 = vld [vmem:[#allocation5 + $0x18] sm:$0xff]  ;;  %v98_v43 = vld [vmem:[#allocation5 + $0x10] sm:$0xff]  ;;  %v97_v47 = vld [vmem:[#allocation5 + $0x8] sm:$0xff]  ;;  %vm215_vm0 = vcmp.lt.s32.totalorder %v214_v9, 91 }
  0x2b   :  { %263 = vmatpush3.msra.mxu0 %v105_v13  ;;  %316 = vmatpush3.msra.mxu1 %v105_v13  ;;  %343 = vpow2.f32 %v249_v29  ;;  %v112_v50 = vld [vmem:[#allocation5 + $0x80] sm:$0xff] }
  0x2c   :  { %264 = vmatprep.subr.mxu0 %v120_v14  ;;  %301 = vmatprep.subr.mxu1 %v120_v14  ;;  %345 = vpow2.f32 %v244_v31  ;;  %v96_v53 = vld [vmem:[#allocation5] sm:$0xff] }
  0x2d   :  { %265 = vmatpush3.msra.mxu0 %v104_v16  ;;  %317 = vmatpush3.msra.mxu1 %v104_v16  ;;  %347 = vpow2.f32 %v248_v34 }
  0x2e   :  { %266 = vmatprep.subr.mxu0 %v119_v27  ;;  %302 = vmatprep.subr.mxu1 %v119_v27 }
  0x2f   :  { %267 = vmatpush3.msra.mxu0 %v103_v30  ;;  %318 = vmatpush3.msra.mxu1 %v103_v30 }
  0x30   :  { %268 = vmatprep.subr.mxu0 %v118_v33  ;;  %303 = vmatprep.subr.mxu1 %v118_v33 }
  0x31   :  { %269 = vmatpush3.msra.mxu0 %v102_v35  ;;  %319 = vmatpush3.msra.mxu1 %v102_v35 }
  0x32   :  { %270 = vmatprep.subr.mxu0 %v117_v36  ;;  %304 = vmatprep.subr.mxu1 %v117_v36 }
  0x33   :  { %271 = vmatpush3.msra.mxu0 %v101_v37  ;;  %320 = vmatpush3.msra.mxu1 %v101_v37  ;;  %v334_v44 = vpop.eup %333 }
  0x34   :  { %272 = vmatprep.subr.mxu0 %v116_v38  ;;  %305 = vmatprep.subr.mxu1 %v116_v38  ;;  %v336_v46 = vpop.eup %335  ;;  %v73_v48 = vadd.f32 1.0, %v334_v44 }
  0x35   :  { %273 = vmatpush3.msra.mxu0 %v100_v39  ;;  %321 = vmatpush3.msra.mxu1 %v100_v39  ;;  %v338_v49 = vpop.eup %337  ;;  %v77_v51 = vadd.f32 1.0, %v336_v46 }
  0x36   :  { %274 = vmatprep.subr.mxu0 %v115_v40  ;;  %306 = vmatprep.subr.mxu1 %v115_v40  ;;  %v340_v52 = vpop.eup %339  ;;  %349 = vrcp.f32 %v73_v48  ;;  %v72_v54 = vadd.f32 1.0, %v338_v49 }
  0x37   :  { %275 = vmatpush3.msra.mxu0 %v99_v41  ;;  %322 = vmatpush3.msra.mxu1 %v99_v41  ;;  %v342_v55 = vpop.eup %341  ;;  %351 = vrcp.f32 %v77_v51  ;;  %v76_v56 = vadd.f32 1.0, %v340_v52 }
  0x38   :  { %276 = vmatprep.subr.mxu0 %v114_v42  ;;  %307 = vmatprep.subr.mxu1 %v114_v42  ;;  %v344_v57 = vpop.eup %343  ;;  %353 = vrcp.f32 %v72_v54  ;;  %v75_v58 = vadd.f32 1.0, %v342_v55 }
  0x39   :  { %277 = vmatpush3.msra.mxu0 %v98_v43  ;;  %323 = vmatpush3.msra.mxu1 %v98_v43  ;;  %v346_v59 = vpop.eup %345  ;;  %355 = vrcp.f32 %v76_v56  ;;  %v79_v60 = vadd.f32 1.0, %v344_v57 }
  0x3a   :  { %278 = vmatprep.subr.mxu0 %v113_v45  ;;  %308 = vmatprep.subr.mxu1 %v113_v45  ;;  %v348_v61 = vpop.eup %347  ;;  %357 = vrcp.f32 %v75_v58  ;;  %v74_v62 = vadd.f32 1.0, %v346_v59 }
  0x3b   :  { %279 = vmatpush3.msra.mxu0 %v97_v47  ;;  %324 = vmatpush3.msra.mxu1 %v97_v47  ;;  %359 = vrcp.f32 %v79_v60  ;;  %v78_v63 = vadd.f32 1.0, %v348_v61 }
  0x3c   :  { %280 = vmatprep.subr.mxu0 %v112_v50  ;;  %309 = vmatprep.subr.mxu1 %v112_v50  ;;  %361 = vrcp.f32 %v74_v62 }
  0x3d   :  { %281 = vmatpush3.msra.mxu0 %v96_v53  ;;  %325 = vmatpush3.msra.mxu1 %v96_v53  ;;  %363 = vrcp.f32 %v78_v63 }
  0x43   :  { %v350_v0 = vpop.eup %349 }
  0x44   :  { %v352_v1 = vpop.eup %351  ;;  %192 = vmatprep.mubr.f32.mxu0 %v350_v0 }
  0x45   :  { %v354_v2 = vpop.eup %353  ;;  %202 = vmatprep.mubr.f32.mxu1 %v352_v1 }
  0x46   :  { %v356_v3 = vpop.eup %355  ;;  %193 = vmatmul.mubr.f32.vlgmr.msra.gmra.mxu0 %v354_v2 }
  0x47   :  { %v358_v4 = vpop.eup %357  ;;  %203 = vmatmul.mubr.f32.vlgmr.msra.gmra.mxu1 %v356_v3 }
  0x48   :  { %v360_v5 = vpop.eup %359  ;;  %197 = vmatprep.mubr.f32.mxu0 %v358_v4 }
  0x49   :  { %v362_v6 = vpop.eup %361  ;;  %207 = vmatprep.mubr.f32.mxu1 %v360_v5 }
  0x4a   :  { %v364_v7 = vpop.eup %363  ;;  %198 = vmatmul.mubr.f32.gmra.mxu0 %v362_v6 }
  0x4b   :  { %208 = vmatmul.mubr.f32.gmra.mxu1 %v364_v7 }
 0x106   :  { %v282_v10 = vpop.f32.mrf.mxu0 }
 0x107   :  { %v288_v11 = vpop.f32.mrf.mxu1 }
 0x108   :  { %v283_v12 = vpop.f32.mrf.mxu0 }
 0x109   :  { %v284_v13 = vadd.f32 %v283_v12, %v282_v10  ;;  %v289_v14 = vpop.f32.mrf.mxu1 }
 0x10a   :  { %v290_v15 = vadd.f32 %v289_v14, %v288_v11  ;;  %v285_v16 = vpop.f32.mrf.mxu0 }
 0x10b   :  { %v216_v17 = vsel %vm215_vm0, %v284_v13, -1e+30  ;;  %v291_v18 = vpop.f32.mrf.mxu1 }
 0x10c   :  { %220 = vst [vmem:[#allocation7] sm:$0xff] %v216_v17  ;;  %v218_v19 = vsel %vm215_vm0, %v290_v15, -1e+30  ;;  %v286_v20 = vpop.f32.mrf.mxu0 }
 0x10d   :  { %222 = vst [vmem:[#allocation7 + $0x10] sm:$0xff] %v218_v19  ;;  %v287_v21 = vadd.f32 %v286_v20, %v285_v16  ;;  %v292_v22 = vpop.f32.mrf.mxu1 }
 0x10e   :  { %v293_v23 = vadd.f32 %v292_v22, %v291_v18 }
 0x10f   :  { %v217_v24 = vsel %vm215_vm0, %v287_v21, -1e+30 }
 0x110   :  { %221 = vst [vmem:[#allocation7 + $0x8] sm:$0xff] %v217_v24  ;;  %v219_v25 = vsel %vm215_vm0, %v293_v23, -1e+30 }
 0x111   :  { %223 = vst [vmem:[#allocation7 + $0x18] sm:$0xff] %v219_v25 }
 0x112   :  { %416 = shalt.err (!%p413_p0)
}
 0x113   :  { %235 = dma.vmem_to_hbm [thread:$0]  %s230_s1, 512, %s474_s2, [#allocation4], %s435_s19, %s435_s19, %s436_s20  }
 0x114   :  { %429 = dma.done.wait [#allocation4], 512  }
 0x115   :  { %430 = vsyncadd [#allocation4], 4294966784 }
 0x116   :  { %239 = vsyncpa [#allocation3], 1 }
 0x117   :  { %240 = vsyncpa [#allocation6], 1 }
 0x118   :  { %241 = vsyncpa [#allocation4], 1 }

</bundles_post_ra>
